<compile_context>
chip_gen: v5e
topology: v5e:2x2
jax: 0.10.0
libtpu: 0.0.40
codegen_flags: <defaults>
</compile_context>

<pallas_src>
import functools

import jax
import jax.numpy as jnp
from jax import lax
from jax.experimental import pallas as pl
from jax.experimental.pallas import tpu as pltpu


def _sparsify_ch_kernel(x_ref, o_ref, *, topk: int):
    # x_ref / o_ref: (1, C, T) VMEM tiles.  Channels on sublanes, spatial on lanes.
    x = x_ref[...]
    C = x.shape[1]

    # Channel indices along the sublane axis only; broadcast lazily on lanes
    # (avoids a full-tile int32 iota living in VMEM).
    ch_idx = lax.broadcasted_iota(jnp.int32, (1, C, 1), 1)
    neg_inf = jnp.array(-jnp.inf, dtype=x.dtype)

    # ---- iteration 0 peeled: nothing selected yet, so `cur` is just `x` ----
    cur_max = jnp.max(x, axis=1, keepdims=True)                         # (1, 1, T)
    first = jnp.min(jnp.where(x == cur_max, ch_idx, C), axis=1, keepdims=True)
    selected = ch_idx == first                                          # (1, C, T)

    # ---- remaining top-k iterations (topk is small & static -> unrolled) ---
    for _ in range(1, topk):
        cur = jnp.where(selected, neg_inf, x)
        cur_max = jnp.max(cur, axis=1, keepdims=True)
        first = jnp.min(jnp.where(cur == cur_max, ch_idx, C), axis=1, keepdims=True)
        selected = selected | (ch_idx == first)

    o_ref[...] = jnp.where(selected, x, 0).astype(o_ref.dtype)


_T_CAP_LANES = 2048      # roofline plateau is ~512-1024 lanes; cap keeps v7x VMEM happy
_MIN_TOTAL_STEPS = 16    # ~8 pipelined steps per TensorCore on v7x


def _round_up(a: int, b: int) -> int:
    return -(-a // b) * b


def _pick_spatial_tiling(HW: int, N: int, t_budget: int):
    """Return (tile_hw, num_tiles) with tile_hw a multiple of 128 (or == HW)."""
    if HW <= 128:
        return HW, 1                                   # full extent: no 128-divisibility needed
    t_max = max(128, (min(t_budget, _T_CAP_LANES, HW) // 128) * 128)
    max_tiles = pl.cdiv(HW, 128)
    want = max(pl.cdiv(HW, t_max), pl.cdiv(_MIN_TOTAL_STEPS, N))
    want = min(want, max_tiles)
    if (N * want) % 2 == 1 and want < max_tiles:
        want += 1                                      # even total steps -> both v7x TCs busy
    # Prefer an exact split: every tile lane-dense -> unmasked vst on the output.
    for nt in range(want, max_tiles + 1):
        t = HW // nt
        if HW % nt == 0 and t % 128 == 0 and t <= t_max:
            return t, nt
    # Fall back to a masked final tile.
    tile = max(128, min(t_max, _round_up(pl.cdiv(HW, want), 128)))
    return tile, pl.cdiv(HW, tile)


def sparsify_ch(x: jax.Array, topk: int, *,
                vmem_budget_bytes: int = 12 * 1024 * 1024) -> jax.Array:
    """x: (N, C, H, W) float array; keeps only the top-k channels per pixel."""
    N, C, H, W = x.shape
    assert topk <= C, f"Sparse K ({topk}) is larger than the sparse dim ({C})"
    assert jnp.issubdtype(x.dtype, jnp.floating), "sparsify_ch requires a float dtype"

    if topk == C:                      # mask is all ones -> identity
        return x

    HW = H * W
    itemsize = jnp.dtype(x.dtype).itemsize

    # --- VMEM accounting with (8,128) sublane padding ------------------------
    # x-dtype rows pack 8 * (4/itemsize) per 32-bit vreg tile (8 for f32, 16 for
    # bf16); int32/bool temporaries pad to 8 rows.
    c_pad_x = _round_up(C, 8 * max(1, 4 // itemsize))
    c_pad_32 = _round_up(C, 8)
    # 2x double-buffered input + 2x double-buffered output blocks (x dtype) plus
    # ~4 live full-tile temporaries (select inputs/outputs, masks) at 32-bit.
    bytes_per_lane = 4 * c_pad_x * itemsize + 4 * c_pad_32 * 4
    t_budget = max(128, (vmem_budget_bytes // bytes_per_lane) // 128 * 128)

    tile_hw, num_tiles = _pick_spatial_tiling(HW, N, t_budget)

    x2 = x.reshape(N, C, HW)
    kernel = functools.partial(_sparsify_ch_kernel, topk=topk)

    cost = pl.CostEstimate(
        flops=2 * topk * N * C * HW,          # compares/selects; essentially free
        transcendentals=0,
        bytes_accessed=2 * N * C * HW * itemsize,
    )

    out = pl.pallas_call(
        kernel,
        out_shape=jax.ShapeDtypeStruct((N, C, HW), x.dtype),
        grid_spec=pltpu.PrefetchScalarGridSpec(
            num_scalar_prefetch=0,
            grid=(N, num_tiles),
            in_specs=[
                pl.BlockSpec((1, C, tile_hw), lambda n, s: (n, 0, s)),
            ],
            out_specs=pl.BlockSpec((1, C, tile_hw), lambda n, s: (n, 0, s)),
        ),
        compiler_params=pltpu.CompilerParams(
            dimension_semantics=("parallel", "parallel"),
            # Modest limit: raises v5e's 16 MiB scoped default, matches the
            # v6e/v7x defaults, and leaves ample headroom on v7x's 64 MiB VMEM
            # now that tiles are capped at <=2048 lanes.
            vmem_limit_bytes=32 * 1024 * 1024,
        ),
        cost_estimate=cost,
    )(x2)

    return out.reshape(N, C, H, W)


def _reference_sparsify_ch(x, topk):
    # Pure-JAX reference mimicking torch.topk + scatter mask along dim=1.
    xt = jnp.moveaxis(x, 1, -1)                                  # (N, H, W, C)
    _, idx = lax.top_k(xt, topk)                                 # (N, H, W, k)
    onehot = jax.nn.one_hot(idx, xt.shape[-1], dtype=x.dtype)    # (N, H, W, k, C)
    mask = jnp.clip(jnp.sum(onehot, axis=-2), 0, 1)              # (N, H, W, C)
    return jnp.moveaxis(mask, -1, 1) * x


if __name__ == "__main__":
    key = jax.random.PRNGKey(0)
    N, C, H, W = 2, 4, 16, 16
    topk = 2

    x = jax.random.normal(key, (N, C, H, W), dtype=jnp.float32)

    y = sparsify_ch(x, topk)
    y = jax.block_until_ready(y)

    # sanity check against a pure-JAX reference
    y_ref = _reference_sparsify_ch(x, topk)
    assert jnp.allclose(y, y_ref, atol=1e-6), "mismatch vs reference"
    # exactly topk nonzeros per pixel (continuous random values -> no exact zeros)
    nz = jnp.sum((y != 0).astype(jnp.int32), axis=1)
    assert bool(jnp.all(nz == topk))

    print("KERNEL_OK")
</pallas_src>

<mosaic_0001>
module attributes {stable_mosaic.version = 11 : i64} {
  func.func @_sparsify_ch_kernel(%arg0: i32, %arg1: i32, %arg2: memref<1x4x128xf32, #tpu.memory_space<vmem>>, %arg3: memref<1x4x128xf32, #tpu.memory_space<vmem>>) attributes {dimension_semantics = [#tpu.dimension_semantics<parallel>, #tpu.dimension_semantics<parallel>], iteration_bounds = array<i64: 2, 2>, scalar_prefetch = 0 : i64, scratch_operands = 0 : i64, tpu.core_type = #tpu.core_type<tc>, window_params = [{transform_indices = @transform_0, window_bounds = array<i64: 1, 4, 128>}, {transform_indices = @transform_1, window_bounds = array<i64: 1, 4, 128>}]} {
    %c0 = arith.constant 0 : index
    %c0_0 = arith.constant 0 : index
    %c0_1 = arith.constant 0 : index
    %0 = vector.load %arg2[%c0, %c0_0, %c0_1] : memref<1x4x128xf32, #tpu.memory_space<vmem>>, vector<1x4x128xf32>
    %1 = tpu.iota {dimensions = array<i32: 1>} : vector<1x4x1xi32>
    %cst = arith.constant dense<0xFF800000> : vector<1x128xf32>
    %2 = vector.multi_reduction <maximumf>, %0, %cst [1] : vector<1x4x128xf32> to vector<1x128xf32>
    %3 = vector.shape_cast %2 : vector<1x128xf32> to vector<1x1x128xf32>
    %4 = vector.broadcast %3 : vector<1x1x128xf32> to vector<1x4x128xf32>
    %5 = arith.cmpf oeq, %0, %4 : vector<1x4x128xf32>
    %c4_i32 = arith.constant 4 : i32
    %6 = vector.shape_cast %1 : vector<1x4x1xi32> to vector<1x4x1xi32>
    %7 = vector.broadcast %6 : vector<1x4x1xi32> to vector<1x4x128xi32>
    %8 = vector.broadcast %c4_i32 : i32 to vector<1x4x128xi32>
    %9 = arith.select %5, %7, %8 : vector<1x4x128xi1>, vector<1x4x128xi32>
    %cst_2 = arith.constant dense<2147483647> : vector<1x128xi32>
    %10 = vector.multi_reduction <minsi>, %9, %cst_2 [1] : vector<1x4x128xi32> to vector<1x128xi32>
    %11 = vector.shape_cast %10 : vector<1x128xi32> to vector<1x1x128xi32>
    %12 = vector.broadcast %1 : vector<1x4x1xi32> to vector<1x4x128xi32>
    %13 = vector.broadcast %11 : vector<1x1x128xi32> to vector<1x4x128xi32>
    %14 = arith.cmpi eq, %12, %13 : vector<1x4x128xi32>
    %cst_3 = arith.constant 0xFF800000 : f32
    %15 = vector.broadcast %cst_3 : f32 to vector<1x4x128xf32>
    %16 = arith.select %14, %15, %0 : vector<1x4x128xi1>, vector<1x4x128xf32>
    %cst_4 = arith.constant dense<0xFF800000> : vector<1x128xf32>
    %17 = vector.multi_reduction <maximumf>, %16, %cst_4 [1] : vector<1x4x128xf32> to vector<1x128xf32>
    %18 = vector.shape_cast %17 : vector<1x128xf32> to vector<1x1x128xf32>
    %19 = vector.broadcast %18 : vector<1x1x128xf32> to vector<1x4x128xf32>
    %20 = arith.cmpf oeq, %16, %19 : vector<1x4x128xf32>
    %c4_i32_5 = arith.constant 4 : i32
    %21 = vector.shape_cast %1 : vector<1x4x1xi32> to vector<1x4x1xi32>
    %22 = vector.broadcast %21 : vector<1x4x1xi32> to vector<1x4x128xi32>
    %23 = vector.broadcast %c4_i32_5 : i32 to vector<1x4x128xi32>
    %24 = arith.select %20, %22, %23 : vector<1x4x128xi1>, vector<1x4x128xi32>
    %cst_6 = arith.constant dense<2147483647> : vector<1x128xi32>
    %25 = vector.multi_reduction <minsi>, %24, %cst_6 [1] : vector<1x4x128xi32> to vector<1x128xi32>
    %26 = vector.shape_cast %25 : vector<1x128xi32> to vector<1x1x128xi32>
    %27 = vector.broadcast %1 : vector<1x4x1xi32> to vector<1x4x128xi32>
    %28 = vector.broadcast %26 : vector<1x1x128xi32> to vector<1x4x128xi32>
    %29 = arith.cmpi eq, %27, %28 : vector<1x4x128xi32>
    %30 = arith.ori %14, %29 : vector<1x4x128xi1>
    %c0_i32 = arith.constant 0 : i32
    %31 = arith.sitofp %c0_i32 : i32 to f32
    %32 = vector.broadcast %31 : f32 to vector<1x4x128xf32>
    %33 = arith.select %30, %0, %32 : vector<1x4x128xi1>, vector<1x4x128xf32>
    %c0_7 = arith.constant 0 : index
    %c0_8 = arith.constant 0 : index
    %c0_9 = arith.constant 0 : index
    %34 = vector.load %arg3[%c0_7, %c0_8, %c0_9] : memref<1x4x128xf32, #tpu.memory_space<vmem>>, vector<1x4x128xf32>
    tpu.vector_store %arg3[%c0_7, %c0_8, %c0_9], %33 {strides = array<i32>} : memref<1x4x128xf32, #tpu.memory_space<vmem>>, vector<1x4x128xf32>,
    return
  }
  func.func @transform_0(%arg0: i32, %arg1: i32) -> (i32, i32, i32) {
    %c0_i32 = arith.constant 0 : i32
    %c0_i32_0 = arith.constant 0 : i32
    return %arg0, %c0_i32, %arg1 : i32, i32, i32
  }
  func.func @transform_1(%arg0: i32, %arg1: i32) -> (i32, i32, i32) {
    %c0_i32 = arith.constant 0 : i32
    %c0_i32_0 = arith.constant 0 : i32
    return %arg0, %c0_i32, %arg1 : i32, i32, i32
  }
}

</mosaic_0001>

<bundles_post_ra>
// kernel: tpu_custom_call.1
= control target key start
LH: loop header
LB: loop body
LE: loop exit
PB: predicated region body
PF: predicated region fallthrough
CT: control target
= control target key end

     0   :  { %6 = vsyncpa [#allocation3], 0  ;;  %s688_s0 = inlined_call_operand.hbm [shape: f32[2,4,256], index: 0, kind: input, shape index: {}]   ;;  %s689_s1 = inlined_call_operand.hbm [shape: f32[2,4,256], index: 1, kind: output, shape index: {}]  }
   0x1   :  { %8 = vsyncpa [#allocation3 + $0x1], 0 }
   0x2   :  { %9 = vsyncpa [#allocation4], 0 }
   0x3   :  { %11 = vsyncpa [#allocation4 + $0x1], 0  ;;  %s536_s6 = smov 0   ;;  %s538_s7 = smov 0  }
   0x4   :  { %s540_s8 = smov 0   ;;  %s542_s9 = smov 0  }
   0x5   :  { %s544_s10 = smov 0   ;;  %s546_s11 = smov 0  }
   0x6   :  { %s548_s12 = smov 0   ;;  %s550_s13 = smov 0  }
   0x7 LB: > { %s303_s14 = sadd.s32 4294967295, %s524_s13   ;;  %s304_s15 = sadd.s32 4294967294, %s524_s13   ;;  %s524_s13 = sphi %s550_s13, %s17_s13   ;;  %s520_s12 = sphi %s548_s12, %s700_s12   ;;  %s516_s11 = sphi %s546_s11, %s699_s11   ;;  %s512_s10 = sphi %s544_s10, %s698_s10   ;;  %s508_s9 = sphi %s542_s9, %s697_s9   ;;  %s504_s8 = sphi %s540_s8, %s696_s8   ;;  %s500_s7 = sphi %s538_s7, %s695_s7   ;;  %s496_s6 = sphi %s536_s6, %s694_s6  }
   0x8   : > { %s26_s16 = sadd.s32 1, %s516_s11  ;;  %s29_s17 = sadd.s32 1, %s520_s12 }
   0x9   : > { %p27_p0 = scmp.ge.s32.totalorder %s26_s16, 2  ;;  %s38_s18 = sadd.s32 1, %s504_s8 }
   0xa   : > { %p45_p1 = scmp.ne.s32.totalorder %s504_s8, %s500_s7  ;;  %p46_p2 = scmp.eq.s32.totalorder %s524_s13, 0 }
   0xb   : > { %s702_s16 = smov (%p27_p0, %s26_s16), 0  ;;  %s704_s17 = smov (!%p27_p0, %s29_s17), %s520_s12 }
   0xc   : > { %s34_s19 = ssub.s32 %s516_s11, %s702_s16  ;;  %p589_p3 = por %p46_p2, %p45_p1 }
   0xd   : > { %p31_p4 = scmp.ge.s32.totalorder %s704_s17, 2  ;;  %p51_p5 = scmp.ne.s32.totalorder %s500_s7, %s496_s6 }
   0xe   : > { %p52_p6 = scmp.eq.s32.totalorder %s303_s14, 0  ;;  %p77_p7 = scmp.eq.s32.totalorder %s303_s14, 3 }
   0xf   : > { %s706_s17 = smov (%p31_p4, %s704_s17), 0  ;;  %p83_p10 = scmp.eq.s32.totalorder %s304_s15, 3 }
  0x10   : > { %p597_p8 = por %p52_p6, %p51_p5  ;;  %p601_p9 = por %p77_p7, %p45_p1 }
  0x11   : > { %s33_s23 = ssub.s32 %s520_s12, %s706_s17  ;;  %p607_p12 = por %p83_p10, %p51_p5 }
  0x12   : > { %s35_s24 = sor.u32 %s34_s19, %s33_s23  ;;  %p330_p13 = scmp.lt.s32.totalorder %s524_s13, 4 }
  0x13   : > { %p36_p11 = scmp.eq.s32.totalorder %s35_s24, 0  ;;  %s103_s26 = sand.u32 1, %s504_s8  }
  0x14   : > { %s307_s28 = sshll.u32 %s103_s26, 2  ;;  %s308_s29 = sshll.u32 %s520_s12, 1 }
  0x15   : > { %s614_s27 = scalar_select %p36_p11, %s504_s8, %s38_s18  }
  0x16   : > { %s111_s30 = sadd.s32 %s516_s11, %s308_s29  ;;  %s107_s2 = scalar_lea.vmem [#allocation2], %s307_s28 }
  0x17   : > { %s117_s3 = sshll.u32 %s107_s2, 4  ;;  %s309_s4 = sshll.u32 %s111_s30, 2  ;;  %s118_s3 = int_to_ptr.vmem [resolvable:$true] %s117_s3 }
  0x18   : > { %s113_s15 = scalar_lea.hbm %s688_s0, %s309_s4  ;;  %p323_p0 = pnand %p330_p13, %p589_p3 }
  0x19   : > { %s115_s19 = sshll.u32 %s113_s15, 4  ;;  %p310_p1 = scmp.ge.s32.totalorder %s524_s13, 1  ;;  %s116_s19 = int_to_ptr.hbm [resolvable:$true] %s115_s19 }
  0x1a   : > { %s104_s23 = scalar_lea.sflag [#allocation3], %s103_s26  ;;  %p122_p2 = scmp.lt.s32.totalorder %s524_s13, 5 }
  0x1b   : > { %325 = dma.hbm_to_vmem [thread:$0]  (!%p323_p0), %s116_s19, 64, %s118_s3, %s104_s23  }
  0x1c   : > { %p123_p4 = pnand %p310_p1, %p122_p2 }
  0x1d   : > { %s626_s18 = sand.u32 (!%p123_p4), 1, %s500_s7  }
  0x1e   : > { %126 = sbr.rel (%p123_p4) target bundleno = 101 (0x65), region = 24  ;;  %s311_s24 = sshll.u32 (!%p123_p4), %s626_s18, 2 }
  0x1f   : > { %s129_s28 = scalar_lea.sflag (!%p123_p4), [#allocation3], %s626_s18  ;;  %s132_s20 = scalar_lea.vmem (!%p123_p4), [#allocation2], %s311_s24 }
  0x23   : > { %487 = dma.done.wait (%p597_p8), %s129_s28, 64  }
  0x24   : > { %489 = vsyncadd (%p597_p8), %s129_s28, 4294967232  ;;  %vm155_vm0 = vcmask 1043456   ;;  %v152_v0 = vld [vmem:[%s132_s20] sm:$0xf]  ;;  %v153_v5 = vlaneseq  ;;  %s314_s21 = sshll.u32 %s512_s10, 1  ;;  %s151_s10 = scalar_lea.vmem [#allocation5], %s311_s24 }
  0x25   : > { %v156_v1 = vsel %vm155_vm0, %v152_v0, -inf  ;;  %s211_s26 = sadd.s32 %s508_s9, %s314_s21  ;;  %s215_s4 = sshll.u32 %s151_s10, 4  ;;  %s216_s4 = int_to_ptr.vmem [resolvable:$true] %s215_s4 }
  0x26   : > { %v157_v2 = vrot.slane %v156_v1, 4  ;;  %v154_v8 = vshrl.u32 %v153_v5, 7  ;;  %s315_s29 = sshll.u32 %s211_s26, 2  ;;  %s201_s9 = scalar_lea.sflag [#allocation4], %s626_s18 }
  0x27   : > { %s213_s3 = scalar_lea.hbm %s689_s1, %s315_s29  ;;  %s446_s24 = scalar_lea.hbm %s689_s1, 16 }
  0x28   : > { %v158_v3 = vmax.f32 %v156_v1, %v157_v2  ;;  %s217_s5 = sshll.u32 %s213_s3, 4  ;;  %s218_s5 = int_to_ptr.hbm [resolvable:$true] %s217_s5 }
  0x29   : > { %s440_s14 = sshra.s32 %s218_s5, 4  ;;  %s441_s14 = int_to_ptr.hbm [resolvable:$true] %s440_s14 }
  0x2a   : > { %v159_v4 = vrot.slane %v158_v3, 2  ;;  %s442_s15 = scalar_lea.hbm %s441_s14, 4  ;;  %p447_p7 = scmp.lt.s32.totalorder %s441_s14, %s689_s1 }
  0x2b   : > { %p443_p3 = scmp.ne.s32.totalorder %s441_s14, %s442_s15  ;;  %p448_p8 = scmp.lt.s32.totalorder %s446_s24, %s442_s15 }
  0x2c   : > { %v160_v6 = vmax.f32 %v158_v3, %v159_v4 }
  0x2d   : > { %p444_p5 = pnand %p443_p3, %p601_p9  ;;  %p449_p10 = por %p448_p8, %p447_p7 }
  0x2e   : > { %v161_v7 = vrot.slane %v160_v6, 1 }
  0x2f   : > { %p445_p6 = pneg %p444_p5 }
  0x30   : > { %v162_v9 = vmax.f32 %v160_v6, %v161_v7 }
  0x31   : > { %p450_p11 = pnand %p449_p10, %p445_p6 }
  0x32   : > { %vm163_vm1 = vcmp.eq.f32.partialorder %v152_v0, %v162_v9 }
  0x33   : > { %v164_v10 = vsel %vm163_vm1, %v154_v8, 4 }
  0x34   : > { %v165_v11 = vsel %vm155_vm0, %v164_v10, 2147483647 }
  0x35   : > { %v166_v12 = vrot.slane %v165_v11, 4 }
  0x37   : > { %vm167_vm2 = vcmp.lt.s32.totalorder %v165_v11, %v166_v12 }
  0x38   : > { %v168_v13 = vsel %vm167_vm2, %v165_v11, %v166_v12 }
  0x39   : > { %v169_v14 = vrot.slane %v168_v13, 2 }
  0x3b   : > { %vm170_vm3 = vcmp.lt.s32.totalorder %v168_v13, %v169_v14 }
  0x3c   : > { %v171_v15 = vsel %vm170_vm3, %v168_v13, %v169_v14 }
  0x3d   : > { %v172_v16 = vrot.slane %v171_v15, 1 }
  0x3f   : > { %vm173_vm4 = vcmp.lt.s32.totalorder %v171_v15, %v172_v16 }
  0x40   : > { %v174_v17 = vsel %vm173_vm4, %v171_v15, %v172_v16 }
  0x41   : > { %vm175_vm5 = vcmp.eq.s32.totalorder %v154_v8, %v174_v17 }
  0x42   : > { %v176_v18 = vsel %vm175_vm5, -inf, %v152_v0 }
  0x43   : > { %v177_v19 = vsel %vm155_vm0, %v176_v18, -inf }
  0x44   : > { %v178_v20 = vrot.slane %v177_v19, 4 }
  0x46   : > { %v179_v21 = vmax.f32 %v177_v19, %v178_v20 }
  0x48   : > { %v180_v22 = vrot.slane %v179_v21, 2 }
  0x4a   : > { %v181_v23 = vmax.f32 %v179_v21, %v180_v22 }
  0x4c   : > { %v182_v24 = vrot.slane %v181_v23, 1 }
  0x4e   : > { %v183_v25 = vmax.f32 %v181_v23, %v182_v24 }
  0x50   : > { %vm184_vm6 = vcmp.eq.f32.partialorder %v176_v18, %v183_v25 }
  0x51   : > { %v185_v26 = vsel %vm184_vm6, %v154_v8, 4 }
  0x52   : > { %v186_v27 = vsel %vm155_vm0, %v185_v26, 2147483647 }
  0x53   : > { %v187_v28 = vrot.slane %v186_v27, 4 }
  0x55   : > { %vm188_vm7 = vcmp.lt.s32.totalorder %v186_v27, %v187_v28 }
  0x56   : > { %v189_v29 = vsel %vm188_vm7, %v186_v27, %v187_v28 }
  0x57   : > { %v190_v30 = vrot.slane %v189_v29, 2 }
  0x59   : > { %vm191_vm8 = vcmp.lt.s32.totalorder %v189_v29, %v190_v30 }
  0x5a   : > { %v192_v31 = vsel %vm191_vm8, %v189_v29, %v190_v30 }
  0x5b   : > { %v193_v32 = vrot.slane %v192_v31, 1 }
  0x5d   : > { %vm194_vm9 = vcmp.lt.s32.totalorder %v192_v31, %v193_v32 }
  0x5e   : > { %v195_v33 = vsel %vm194_vm9, %v192_v31, %v193_v32 }
  0x5f   : > { %vm196_vm10 = vcmp.eq.s32.totalorder %v154_v8, %v195_v33 }
  0x60   : > { %vm197_vm11 = vmor %vm175_vm5, %vm196_vm10 }
  0x61   : > { %v198_v34 = vsel %vm197_vm11, %v152_v0, 0.0 }
  0x62   : > { %199 = vst [vmem:[%s151_s10] sm:$0xf] %v198_v34 }
  0x63   : > { %453 = shalt.err (!%p450_p11)
}
  0x64   : > { %320 = dma.vmem_to_hbm [thread:$0]  (%p601_p9), %s216_s4, 64, %s218_s5, %s201_s9  }
  0x65 PF: > { %p331_p13 = scmp.ge.s32.totalorder %s524_s13, 2  ;;  %s229_s18 = sand.u32 1, %s496_s6  }
  0x66   : > { %s230_s21 = scalar_lea.sflag [#allocation4], %s229_s18 }
  0x67   : > { %p327_p0 = pnand %p331_p13, %p607_p12 }
  0x69   : > { %p328_p1 = pneg %p327_p0 }
  0x6b   : > { %491 = dma.done.wait (%p328_p1), %s230_s21, 64  }
  0x6c   : > { %493 = vsyncadd (%p328_p1), %s230_s21, 4294967232  ;;  %s17_s13 = sadd.s32 1, %s524_s13   ;;  %s694_s6 = smov %s500_s7 }
  0x6d   : > { %p14_p2 = scmp.ge.s32.totalorder %s17_s13, 6   ;;  %s695_s7 = smov %s504_s8 }
  0x6e   : > { %s696_s8 = smov %s614_s27  ;;  %s697_s9 = smov %s516_s11 }
  0x6f   : > { %s698_s10 = smov %s520_s12  ;;  %s699_s11 = smov %s702_s16 }
  0x70   : > { %s700_s12 = smov %s706_s17  ;;  %16 = sbr.rel (!%p14_p2) target bundleno = 7 (0x7), region = 69 }
  0x75   :  { %236 = vsyncpa [#allocation3], 1 }
  0x76   :  { %238 = vsyncpa [#allocation3 + $0x1], 1 }
  0x77   :  { %239 = vsyncpa [#allocation4], 1 }
  0x78   :  { %241 = vsyncpa [#allocation4 + $0x1], 1 }

</bundles_post_ra>
